<compile_context>
chip_gen: v7x
topology: tpu7x:2x2x1
jax: 0.10.0
libtpu: 0.0.40
codegen_flags: <defaults>
</compile_context>

<pallas_src>
import jax
import jax.numpy as jnp
from jax import lax
from jax.experimental import pallas as pl
from jax.experimental.pallas import tpu as pltpu

# ---------------- config (small, deterministic) ----------------
B, LS, LT = 2, 8, 8          # batch, source length, target length (max_target_length)
H, V = 32, 64                # hidden_size, vocab_size
NH, DH = 4, 8                # heads, head dim
DFF = 64                     # feed-forward dim

V_PAD = ((V + 127) // 128) * 128   # lane-aligned vocab tile
LN_EPS = 1e-5


def _round_up(x, m):
    return ((x + m - 1) // m) * m


# ------- Pallas kernel: fused final-LN + tanh(dense) + tied lm_head + masked CE -------
def _make_tail_kernel(v_real):
    def kernel(x_ref, g_ref, b_ref, wdt_ref, bd_ref, lmw_ref, labels_ref, out_ref):
        # x:      (Mt, H)     f32  decoder output rows BEFORE the final LayerNorm
        # g, b:   (1, H)      f32  final decoder LayerNorm gamma / beta
        # wdt:    (H, H)      bf16 decoder_dense.weight, PRE-transposed [in, out]
        # bd:     (1, H)      f32  decoder_dense.bias
        # lmw:    (H, V_PAD)  bf16 tied lm_head weight, PRE-transposed & vocab-padded
        # labels: (Mt, 1)     i32  shifted labels, -1 == ignore
        # out:    (1, 8, 128) f32  [0,0,0]=sum_nll  [0,0,1]=sum_valid
        x = x_ref[...]
        mu = jnp.mean(x, axis=-1, keepdims=True)
        var = jnp.mean((x - mu) * (x - mu), axis=-1, keepdims=True)
        xn = (x - mu) * lax.rsqrt(var + LN_EPS) * g_ref[...] + b_ref[...]

        # hidden = tanh(xn @ Wd^T + b)  (plain (M,K)x(K,N) -- weight pre-transposed)
        pre = jnp.dot(xn.astype(jnp.bfloat16), wdt_ref[...],
                      preferred_element_type=jnp.float32)              # (Mt, H) f32
        h = jnp.tanh(pre + bd_ref[...])

        # logits over the lane-padded vocab -- stays in VMEM.
        logits = jnp.dot(h.astype(jnp.bfloat16), lmw_ref[...],
                         preferred_element_type=jnp.float32)           # (Mt, V_PAD)
        col = lax.broadcasted_iota(jnp.int32, logits.shape, 1)
        logits = jnp.where(col < v_real, logits, -1e9)  # mask padded vocab columns

        labels = labels_ref[...]                                       # (Mt, 1) i32
        valid = (labels >= 0).astype(jnp.float32)                      # (Mt, 1)

        m = jnp.max(logits, axis=-1, keepdims=True)
        shifted = logits - m
        # one traversal of `shifted`: exp-sum and the picked (label) logit
        sum_exp = jnp.sum(jnp.exp(shifted), axis=-1, keepdims=True)
        picked = jnp.sum(jnp.where(col == labels, shifted, 0.0),
                         axis=-1, keepdims=True)                       # (Mt, 1)
        nll = (jnp.log(sum_exp) - picked) * valid

        sum_nll = jnp.sum(nll)
        sum_valid = jnp.sum(valid)
        row = lax.broadcasted_iota(jnp.int32, (1, 8, 128), 1)
        lane = lax.broadcasted_iota(jnp.int32, (1, 8, 128), 2)
        out_ref[...] = jnp.where(
            (row == 0) & (lane == 0), sum_nll,
            jnp.where((row == 0) & (lane == 1), sum_valid, 0.0)).astype(jnp.float32)
    return kernel


def fused_tail_loss(x_pre_ln_2d, kw, labels_col):
    """x_pre_ln_2d: (M, H) f32 decoder rows before the final LayerNorm.
    kw: persistent pre-transposed / vocab-padded / bf16 kernel weights.
    labels_col: (M, 1) int32 shifted labels (-1 = ignore).
    Returns (sum_nll, sum_valid) f32 scalars."""
    M, Hh = x_pre_ln_2d.shape
    v_pad = kw['lm_w'].shape[1]

    m_tile = min(128, _round_up(M, 8))          # 8-row aligned, grows to 128 for real M
    m_pad = _round_up(M, m_tile)
    if m_pad != M:
        x_pre_ln_2d = jnp.pad(x_pre_ln_2d, ((0, m_pad - M), (0, 0)))
        labels_col = jnp.pad(labels_col, ((0, m_pad - M), (0, 0)), constant_values=-1)
    num_tiles = m_pad // m_tile

    partials = pl.pallas_call(
        _make_tail_kernel(V),
        out_shape=jax.ShapeDtypeStruct((num_tiles, 8, 128), jnp.float32),
        grid=(num_tiles,),
        in_specs=[
            pl.BlockSpec((m_tile, Hh), lambda i: (i, 0)),   # x tile
            pl.BlockSpec((1, Hh), lambda i: (0, 0)),        # LN gamma
            pl.BlockSpec((1, Hh), lambda i: (0, 0)),        # LN beta
            pl.BlockSpec((Hh, Hh), lambda i: (0, 0)),       # dense W (pre-transposed)
            pl.BlockSpec((1, Hh), lambda i: (0, 0)),        # dense bias
            pl.BlockSpec((Hh, v_pad), lambda i: (0, 0)),    # lm_head W (pre-T, padded)
            pl.BlockSpec((m_tile, 1), lambda i: (i, 0)),    # labels
        ],
        out_specs=pl.BlockSpec((1, 8, 128), lambda i: (i, 0, 0)),
        compiler_params=pltpu.CompilerParams(
            dimension_semantics=("parallel",)),             # M tiles are independent
    )(x_pre_ln_2d, kw['ln_g'], kw['ln_b'], kw['wd_t'], kw['bd'],
      kw['lm_w'], labels_col)

    sum_nll = jnp.sum(partials[:, 0, 0])
    sum_valid = jnp.sum(partials[:, 0, 1])
    return sum_nll, sum_valid


def prepare_kernel_weights(P):
    """Persistent, pre-transposed, vocab-padded, bf16 replicas of the tail weights.
    In training this runs once per optimizer step, NOT per forward, so the
    transpose + cast HBM traffic is hoisted out of the hot path."""
    lm_w = jnp.pad(P['word_emb'].T, ((0, 0), (0, V_PAD - V)))      # [H, V_PAD]
    return {
        'ln_g': P['dec_ln3_g'].reshape(1, H).astype(jnp.float32),
        'ln_b': P['dec_ln3_b'].reshape(1, H).astype(jnp.float32),
        'wd_t': P['dec_dense_w'].T.astype(jnp.bfloat16),           # [H_in, H_out]
        'bd': P['dec_dense_b'].reshape(1, H).astype(jnp.float32),
        'lm_w': lm_w.astype(jnp.bfloat16),
    }


# ---------------- plain-JAX glue: embeddings / encoder / decoder ----------------
def layer_norm(x, g, b, eps=LN_EPS):
    mu = jnp.mean(x, axis=-1, keepdims=True)
    var = jnp.var(x, axis=-1, keepdims=True)
    return (x - mu) / jnp.sqrt(var + eps) * g + b


def mha(q_in, kv_in, p, attn_bias):
    """q_in: [B, Lq, H], kv_in: [B, Lk, H], attn_bias broadcastable to
    [B, NH, Lq, Lk] (additive, -1e9 at masked positions)."""
    def split(x):
        b, l, _ = x.shape
        return x.reshape(b, l, NH, DH).transpose(0, 2, 1, 3)
    q = split(q_in @ p['wq'] + p['bq'])
    k = split(kv_in @ p['wk'] + p['bk'])
    v = split(kv_in @ p['wv'] + p['bv'])
    s = jnp.einsum('bhqd,bhkd->bhqk', q, k) / jnp.sqrt(jnp.float32(DH)) + attn_bias
    a = jax.nn.softmax(s, axis=-1)
    o = jnp.einsum('bhqk,bhkd->bhqd', a, v)
    o = o.transpose(0, 2, 1, 3).reshape(q_in.shape[0], q_in.shape[1], H)
    return o @ p['wo'] + p['bo']


def embed(ids, P):
    L = ids.shape[1]
    x = P['word_emb'][ids] + P['pos_emb'][:L][None]
    return layer_norm(x, P['emb_ln_g'], P['emb_ln_b'])


def encode(source_ids, source_mask, P):
    # source_attn_mask = (~source_mask): attend only to non-pad positions.
    x = embed(source_ids, P)
    bias = jnp.where(source_mask, -1e9, 0.0)[:, None, None, :]        # [B,1,1,Ls]
    a = mha(x, x, P['enc_attn'], bias)
    x = layer_norm(x + a, P['enc_ln1_g'], P['enc_ln1_b'])
    f = jax.nn.gelu(x @ P['enc_w1'] + P['enc_b1']) @ P['enc_w2'] + P['enc_b2']
    x = layer_norm(x + f, P['enc_ln2_g'], P['enc_ln2_b'])
    return x                                                           # [B, Ls, H]


def decode(tgt_emb, memory, source_mask, P):
    """Returns the PRE-final-LayerNorm decoder activation; the final LN
    (dec_ln3) is fused into the Pallas tail kernel."""
    Lt = tgt_emb.shape[1]
    # attn_mask = (1 - tril(ones)).bool()  ->  mask strictly-upper triangle
    causal = jnp.triu(jnp.ones((Lt, Lt), jnp.bool_), k=1)
    self_bias = jnp.where(causal, -1e9, 0.0)[None, None]
    a = mha(tgt_emb, tgt_emb, P['dec_self'], self_bias)
    y = layer_norm(tgt_emb + a, P['dec_ln1_g'], P['dec_ln1_b'])
    # memory_key_padding_mask = source_mask (True = pad)
    cross_bias = jnp.where(source_mask, -1e9, 0.0)[:, None, None, :]
    c = mha(y, memory, P['dec_cross'], cross_bias)
    y = layer_norm(y + c, P['dec_ln2_g'], P['dec_ln2_b'])
    f = jax.nn.relu(y @ P['dec_w1'] + P['dec_b1']) @ P['dec_w2'] + P['dec_b2']
    return y + f                                                       # [B, Lt, H]


def build_shifted_labels(target_ids, target_mask):
    # row (b, t) pairs logits at position t with label target_ids[b, t+1];
    # the final position per row and padded positions get ignore_index = -1.
    active_loss = (~target_mask)[:, 1:]                                # [B, Lt-1]
    shift_labels = jnp.where(active_loss, target_ids[:, 1:], -1)       # [B, Lt-1]
    labels_full = jnp.concatenate(
        [shift_labels,
         jnp.full((target_ids.shape[0], 1), -1, shift_labels.dtype)], axis=1)
    return labels_full.reshape(-1, 1).astype(jnp.int32)                # [B*Lt, 1]


# ---------------- Seq2Seq forward (training path, target_ids given) ----------------
def seq2seq_forward(P, KW, source_ids, source_mask, target_ids, target_mask):
    encoder_output = encode(source_ids, source_mask, P)                # [B, Ls, H]
    tgt_embeddings = embed(target_ids, P)                              # [B, Lt, H]
    out_pre_ln = decode(tgt_embeddings, encoder_output, source_mask, P)  # [B, Lt, H]

    labels_col = build_shifted_labels(target_ids, target_mask)

    # Pallas fused hot path: final LN -> tanh(dense) -> tied lm_head -> masked CE.
    sum_nll, sum_valid = fused_tail_loss(out_pre_ln.reshape(-1, H), KW, labels_col)

    loss = sum_nll / sum_valid           # NaN for an all-padding batch, like PyTorch
    # PyTorch: (loss, loss * active_loss.sum(), active_loss.sum()) -- scalar totals.
    return loss, sum_nll, sum_valid


# Pure-JAX (f32) reference of the same forward, for a tolerance check only.
def seq2seq_forward_ref(P, source_ids, source_mask, target_ids, target_mask):
    encoder_output = encode(source_ids, source_mask, P)
    tgt_embeddings = embed(target_ids, P)
    out_pre_ln = decode(tgt_embeddings, encoder_output, source_mask, P)
    y = layer_norm(out_pre_ln, P['dec_ln3_g'], P['dec_ln3_b'])
    h = jnp.tanh(y @ P['dec_dense_w'].T + P['dec_dense_b'])
    logits = (h @ P['word_emb'].T).reshape(-1, V)
    labels = build_shifted_labels(target_ids, target_mask)[:, 0]
    valid = labels >= 0
    logp = jax.nn.log_softmax(logits, axis=-1)
    picked = jnp.take_along_axis(logp, jnp.maximum(labels, 0)[:, None], axis=-1)[:, 0]
    nll = jnp.where(valid, -picked, 0.0)
    cnt = valid.sum().astype(jnp.float32)
    return nll.sum() / cnt, nll.sum(), cnt


# ---------------- deterministic parameter init ----------------
def init_params(key):
    keys = iter(jax.random.split(key, 64))
    def w(shape, scale=0.02):
        return (scale * jax.random.normal(next(keys), shape)).astype(jnp.float32)
    def zeros(shape):
        return jnp.zeros(shape, jnp.float32)
    def ones(shape):
        return jnp.ones(shape, jnp.float32)
    def attn():
        return {'wq': w((H, H)), 'bq': zeros((H,)),
                'wk': w((H, H)), 'bk': zeros((H,)),
                'wv': w((H, H)), 'bv': zeros((H,)),
                'wo': w((H, H)), 'bo': zeros((H,))}
    P = {
        'word_emb': w((V, H)),          # shared with lm_head (tie_weights)
        'pos_emb': w((max(LS, LT), H)),
        'emb_ln_g': ones((H,)), 'emb_ln_b': zeros((H,)),
        'enc_attn': attn(),
        'enc_ln1_g': ones((H,)), 'enc_ln1_b': zeros((H,)),
        'enc_w1': w((H, DFF)), 'enc_b1': zeros((DFF,)),
        'enc_w2': w((DFF, H)), 'enc_b2': zeros((H,)),
        'enc_ln2_g': ones((H,)), 'enc_ln2_b': zeros((H,)),
        'dec_self': attn(),
        'dec_ln1_g': ones((H,)), 'dec_ln1_b': zeros((H,)),
        'dec_cross': attn(),
        'dec_ln2_g': ones((H,)), 'dec_ln2_b': zeros((H,)),
        'dec_w1': w((H, DFF)), 'dec_b1': zeros((DFF,)),
        'dec_w2': w((DFF, H)), 'dec_b2': zeros((H,)),
        'dec_ln3_g': ones((H,)), 'dec_ln3_b': zeros((H,)),
        'dec_dense_w': w((H, H)),       # nn.Linear(hidden, hidden) weight [out, in]
        'dec_dense_b': zeros((H,)),
    }
    return P


if __name__ == "__main__":
    key = jax.random.PRNGKey(0)
    k_ids1, k_ids2, k_params = jax.random.split(key, 3)

    source_ids = jax.random.randint(k_ids1, (B, LS), 0, V, dtype=jnp.int32)
    target_ids = jax.random.randint(k_ids2, (B, LT), 0, V, dtype=jnp.int32)
    # masks: True = padding (matches memory_key_padding_mask / ~mask usage)
    src_lens = jnp.array([LS, 6])
    tgt_lens = jnp.array([LT, 5])
    source_mask = jnp.arange(LS)[None, :] >= src_lens[:, None]
    target_mask = jnp.arange(LT)[None, :] >= tgt_lens[:, None]

    params = init_params(k_params)
    # Persistent pre-transposed / padded / bf16 replicas: computed ONCE, not per step.
    kernel_weights = prepare_kernel_weights(params)

    fwd = jax.jit(seq2seq_forward)
    loss, loss_x_cnt, cnt = fwd(params, kernel_weights, source_ids, source_mask,
                                target_ids, target_mask)
    jax.block_until_ready((loss, loss_x_cnt, cnt))

    assert loss.shape == () and bool(jnp.isfinite(loss))
    assert loss_x_cnt.shape == () and cnt.shape == ()

    # Tolerance check vs the pure-JAX f32 reference (bf16 MXU operands in-kernel).
    ref_loss, ref_total, ref_cnt = jax.jit(seq2seq_forward_ref)(
        params, source_ids, source_mask, target_ids, target_mask)
    assert bool(jnp.allclose(cnt, ref_cnt))
    assert bool(jnp.allclose(loss, ref_loss, rtol=2e-2, atol=1e-3))
    assert bool(jnp.allclose(loss_x_cnt, ref_total, rtol=2e-2, atol=1e-2))

    print("KERNEL_OK")
</pallas_src>

<mosaic_0001>
module attributes {stable_mosaic.version = 11 : i64} {
  func.func @kernel(%arg0: i32, %arg1: memref<16x32xf32, #tpu.memory_space<vmem>>, %arg2: memref<1x32xf32, #tpu.memory_space<vmem>>, %arg3: memref<1x32xf32, #tpu.memory_space<vmem>>, %arg4: memref<32x32xbf16, #tpu.memory_space<vmem>>, %arg5: memref<1x32xf32, #tpu.memory_space<vmem>>, %arg6: memref<32x128xbf16, #tpu.memory_space<vmem>>, %arg7: memref<16x1xi32, #tpu.memory_space<vmem>>, %arg8: memref<1x8x128xf32, #tpu.memory_space<vmem>>) attributes {dimension_semantics = [#tpu.dimension_semantics<parallel>], iteration_bounds = array<i64: 1>, scalar_prefetch = 0 : i64, scratch_operands = 0 : i64, tpu.core_type = #tpu.core_type<tc>, window_params = [{transform_indices = @transform_0, window_bounds = array<i64: 16, 32>}, {pipeline_mode = #tpu.pipeline_mode<synchronous>, transform_indices = @transform_1, window_bounds = array<i64: 1, 32>}, {pipeline_mode = #tpu.pipeline_mode<synchronous>, transform_indices = @transform_2, window_bounds = array<i64: 1, 32>}, {pipeline_mode = #tpu.pipeline_mode<synchronous>, transform_indices = @transform_3, window_bounds = array<i64: 32, 32>}, {pipeline_mode = #tpu.pipeline_mode<synchronous>, transform_indices = @transform_4, window_bounds = array<i64: 1, 32>}, {pipeline_mode = #tpu.pipeline_mode<synchronous>, transform_indices = @transform_5, window_bounds = array<i64: 32, 128>}, {transform_indices = @transform_6, window_bounds = array<i64: 16, 1>}, {transform_indices = @transform_7, window_bounds = array<i64: 1, 8, 128>}]} {
    %c0 = arith.constant 0 : index
    %c0_0 = arith.constant 0 : index
    %0 = vector.load %arg1[%c0, %c0_0] : memref<16x32xf32, #tpu.memory_space<vmem>>, vector<16x32xf32>
    %cst = arith.constant dense<0.000000e+00> : vector<16xf32>
    %1 = vector.multi_reduction <add>, %0, %cst [1] : vector<16x32xf32> to vector<16xf32>
    %2 = vector.shape_cast %1 : vector<16xf32> to vector<16x1xf32>
    %cst_1 = arith.constant 3.200000e+01 : f32
    %3 = vector.broadcast %cst_1 : f32 to vector<16x1xf32>
    %4 = arith.divf %2, %3 : vector<16x1xf32>
    %5 = vector.broadcast %4 : vector<16x1xf32> to vector<16x32xf32>
    %6 = arith.subf %0, %5 : vector<16x32xf32>
    %7 = vector.broadcast %4 : vector<16x1xf32> to vector<16x32xf32>
    %8 = arith.subf %0, %7 : vector<16x32xf32>
    %9 = arith.mulf %6, %8 : vector<16x32xf32>
    %cst_2 = arith.constant dense<0.000000e+00> : vector<16xf32>
    %10 = vector.multi_reduction <add>, %9, %cst_2 [1] : vector<16x32xf32> to vector<16xf32>
    %11 = vector.shape_cast %10 : vector<16xf32> to vector<16x1xf32>
    %cst_3 = arith.constant 3.200000e+01 : f32
    %12 = vector.broadcast %cst_3 : f32 to vector<16x1xf32>
    %13 = arith.divf %11, %12 : vector<16x1xf32>
    %14 = vector.broadcast %4 : vector<16x1xf32> to vector<16x32xf32>
    %15 = arith.subf %0, %14 : vector<16x32xf32>
    %cst_4 = arith.constant 9.99999974E-6 : f32
    %16 = vector.broadcast %cst_4 : f32 to vector<16x1xf32>
    %17 = arith.addf %13, %16 : vector<16x1xf32>
    %18 = math.rsqrt %17 : vector<16x1xf32>
    %19 = vector.broadcast %18 : vector<16x1xf32> to vector<16x32xf32>
    %20 = arith.mulf %15, %19 : vector<16x32xf32>
    %c0_5 = arith.constant 0 : index
    %c0_6 = arith.constant 0 : index
    %21 = vector.load %arg2[%c0_5, %c0_6] : memref<1x32xf32, #tpu.memory_space<vmem>>, vector<1x32xf32>
    %22 = vector.broadcast %21 : vector<1x32xf32> to vector<16x32xf32>
    %23 = arith.mulf %20, %22 : vector<16x32xf32>
    %c0_7 = arith.constant 0 : index
    %c0_8 = arith.constant 0 : index
    %24 = vector.load %arg3[%c0_7, %c0_8] : memref<1x32xf32, #tpu.memory_space<vmem>>, vector<1x32xf32>
    %25 = vector.broadcast %24 : vector<1x32xf32> to vector<16x32xf32>
    %26 = arith.addf %23, %25 : vector<16x32xf32>
    %27 = arith.truncf %26 : vector<16x32xf32> to vector<16x32xbf16>
    %c0_9 = arith.constant 0 : index
    %c0_10 = arith.constant 0 : index
    %28 = vector.load %arg4[%c0_9, %c0_10] : memref<32x32xbf16, #tpu.memory_space<vmem>>, vector<32x32xbf16>
    %cst_11 = arith.constant dense<0.000000e+00> : vector<16x32xf32>
    %29 = tpu.matmul %27, %28, %cst_11 {dimension_numbers = #tpu.dot_dimension_numbers<[1], [0], [0], [1], [0, 0, 1, 1], [], []>} : vector<16x32xbf16>, vector<32x32xbf16>, vector<16x32xf32> -> vector<16x32xf32>
    %c0_12 = arith.constant 0 : index
    %c0_13 = arith.constant 0 : index
    %30 = vector.load %arg5[%c0_12, %c0_13] : memref<1x32xf32, #tpu.memory_space<vmem>>, vector<1x32xf32>
    %31 = vector.broadcast %30 : vector<1x32xf32> to vector<16x32xf32>
    %32 = arith.addf %29, %31 : vector<16x32xf32>
    %33 = math.tanh %32 : vector<16x32xf32>
    %34 = arith.truncf %33 : vector<16x32xf32> to vector<16x32xbf16>
    %c0_14 = arith.constant 0 : index
    %c0_15 = arith.constant 0 : index
    %35 = vector.load %arg6[%c0_14, %c0_15] : memref<32x128xbf16, #tpu.memory_space<vmem>>, vector<32x128xbf16>
    %cst_16 = arith.constant dense<0.000000e+00> : vector<16x128xf32>
    %36 = tpu.matmul %34, %35, %cst_16 {dimension_numbers = #tpu.dot_dimension_numbers<[1], [0], [0], [1], [0, 0, 1, 1], [], []>} : vector<16x32xbf16>, vector<32x128xbf16>, vector<16x128xf32> -> vector<16x128xf32>
    %37 = tpu.iota {dimensions = array<i32: 1>} : vector<16x128xi32>
    %c64_i32 = arith.constant 64 : i32
    %38 = vector.broadcast %c64_i32 : i32 to vector<16x128xi32>
    %39 = arith.cmpi slt, %37, %38 : vector<16x128xi32>
    %cst_17 = arith.constant -1.000000e+09 : f32
    %40 = vector.broadcast %cst_17 : f32 to vector<16x128xf32>
    %41 = arith.select %39, %36, %40 : vector<16x128xi1>, vector<16x128xf32>
    %c0_18 = arith.constant 0 : index
    %c0_19 = arith.constant 0 : index
    %42 = vector.load %arg7[%c0_18, %c0_19] : memref<16x1xi32, #tpu.memory_space<vmem>>, vector<16x1xi32>
    %c0_i32 = arith.constant 0 : i32
    %43 = vector.broadcast %c0_i32 : i32 to vector<16x1xi32>
    %44 = arith.cmpi sge, %42, %43 : vector<16x1xi32>
    %45 = arith.extui %44 : vector<16x1xi1> to vector<16x1xi32>
    %46 = arith.sitofp %45 : vector<16x1xi32> to vector<16x1xf32>
    %cst_20 = arith.constant dense<0xFF800000> : vector<16xf32>
    %47 = vector.multi_reduction <maximumf>, %41, %cst_20 [1] : vector<16x128xf32> to vector<16xf32>
    %48 = vector.shape_cast %47 : vector<16xf32> to vector<16x1xf32>
    %49 = vector.broadcast %48 : vector<16x1xf32> to vector<16x128xf32>
    %50 = arith.subf %41, %49 : vector<16x128xf32>
    %51 = math.exp %50 : vector<16x128xf32>
    %cst_21 = arith.constant dense<0.000000e+00> : vector<16xf32>
    %52 = vector.multi_reduction <add>, %51, %cst_21 [1] : vector<16x128xf32> to vector<16xf32>
    %53 = vector.shape_cast %52 : vector<16xf32> to vector<16x1xf32>
    %54 = vector.broadcast %42 : vector<16x1xi32> to vector<16x128xi32>
    %55 = arith.cmpi eq, %37, %54 : vector<16x128xi32>
    %cst_22 = arith.constant 0.000000e+00 : f32
    %56 = vector.broadcast %cst_22 : f32 to vector<16x128xf32>
    %57 = arith.select %55, %50, %56 : vector<16x128xi1>, vector<16x128xf32>
    %cst_23 = arith.constant dense<0.000000e+00> : vector<16xf32>
    %58 = vector.multi_reduction <add>, %57, %cst_23 [1] : vector<16x128xf32> to vector<16xf32>
    %59 = vector.shape_cast %58 : vector<16xf32> to vector<16x1xf32>
    %60 = math.log %53 : vector<16x1xf32>
    %61 = arith.subf %60, %59 : vector<16x1xf32>
    %62 = arith.mulf %61, %46 : vector<16x1xf32>
    %63 = vector.shape_cast %62 : vector<16x1xf32> to vector<1x16x1xf32>
    %cst_24 = arith.constant dense<0.000000e+00> : vector<1xf32>
    %64 = vector.multi_reduction <add>, %63, %cst_24 [1, 2] : vector<1x16x1xf32> to vector<1xf32>
    %65 = vector.shape_cast %64 : vector<1xf32> to vector<1x1x1xf32>
    %66 = vector.extract %65[0, 0, 0] : f32 from vector<1x1x1xf32>
    %67 = vector.shape_cast %46 : vector<16x1xf32> to vector<1x16x1xf32>
    %cst_25 = arith.constant dense<0.000000e+00> : vector<1xf32>
    %68 = vector.multi_reduction <add>, %67, %cst_25 [1, 2] : vector<1x16x1xf32> to vector<1xf32>
    %69 = vector.shape_cast %68 : vector<1xf32> to vector<1x1x1xf32>
    %70 = vector.extract %69[0, 0, 0] : f32 from vector<1x1x1xf32>
    %71 = tpu.iota {dimensions = array<i32: 1>} : vector<1x8x128xi32>
    %72 = tpu.iota {dimensions = array<i32: 2>} : vector<1x8x128xi32>
    %c0_i32_26 = arith.constant 0 : i32
    %73 = vector.broadcast %c0_i32_26 : i32 to vector<1x8x128xi32>
    %74 = arith.cmpi eq, %71, %73 : vector<1x8x128xi32>
    %c0_i32_27 = arith.constant 0 : i32
    %75 = vector.broadcast %c0_i32_27 : i32 to vector<1x8x128xi32>
    %76 = arith.cmpi eq, %72, %75 : vector<1x8x128xi32>
    %77 = arith.andi %74, %76 : vector<1x8x128xi1>
    %c0_i32_28 = arith.constant 0 : i32
    %78 = vector.broadcast %c0_i32_28 : i32 to vector<1x8x128xi32>
    %79 = arith.cmpi eq, %71, %78 : vector<1x8x128xi32>
    %c1_i32 = arith.constant 1 : i32
    %80 = vector.broadcast %c1_i32 : i32 to vector<1x8x128xi32>
    %81 = arith.cmpi eq, %72, %80 : vector<1x8x128xi32>
    %82 = arith.andi %79, %81 : vector<1x8x128xi1>
    %cst_29 = arith.constant 0.000000e+00 : f32
    %83 = vector.broadcast %70 : f32 to vector<1x8x128xf32>
    %84 = vector.broadcast %cst_29 : f32 to vector<1x8x128xf32>
    %85 = arith.select %82, %83, %84 : vector<1x8x128xi1>, vector<1x8x128xf32>
    %86 = vector.broadcast %66 : f32 to vector<1x8x128xf32>
    %87 = arith.select %77, %86, %85 : vector<1x8x128xi1>, vector<1x8x128xf32>
    %c0_30 = arith.constant 0 : index
    %c0_31 = arith.constant 0 : index
    %c0_32 = arith.constant 0 : index
    %88 = vector.load %arg8[%c0_30, %c0_31, %c0_32] : memref<1x8x128xf32, #tpu.memory_space<vmem>>, vector<1x8x128xf32>
    tpu.vector_store %arg8[%c0_30, %c0_31, %c0_32], %87 {strides = array<i32>} : memref<1x8x128xf32, #tpu.memory_space<vmem>>, vector<1x8x128xf32>,
    return
  }
  func.func @transform_0(%arg0: i32) -> (i32, i32) {
    %c0_i32 = arith.constant 0 : i32
    %c0_i32_0 = arith.constant 0 : i32
    return %arg0, %c0_i32 : i32, i32
  }
  func.func @transform_1(%arg0: i32) -> (i32, i32) {
    %c0_i32 = arith.constant 0 : i32
    %c0_i32_0 = arith.constant 0 : i32
    %c0_i32_1 = arith.constant 0 : i32
    return %c0_i32, %c0_i32_0 : i32, i32
  }
  func.func @transform_2(%arg0: i32) -> (i32, i32) {
    %c0_i32 = arith.constant 0 : i32
    %c0_i32_0 = arith.constant 0 : i32
    %c0_i32_1 = arith.constant 0 : i32
    return %c0_i32, %c0_i32_0 : i32, i32
  }
  func.func @transform_3(%arg0: i32) -> (i32, i32) {
    %c0_i32 = arith.constant 0 : i32
    %c0_i32_0 = arith.constant 0 : i32
    %c0_i32_1 = arith.constant 0 : i32
    return %c0_i32, %c0_i32_0 : i32, i32
  }
  func.func @transform_4(%arg0: i32) -> (i32, i32) {
    %c0_i32 = arith.constant 0 : i32
    %c0_i32_0 = arith.constant 0 : i32
    %c0_i32_1 = arith.constant 0 : i32
    return %c0_i32, %c0_i32_0 : i32, i32
  }
  func.func @transform_5(%arg0: i32) -> (i32, i32) {
    %c0_i32 = arith.constant 0 : i32
    %c0_i32_0 = arith.constant 0 : i32
    %c0_i32_1 = arith.constant 0 : i32
    return %c0_i32, %c0_i32_0 : i32, i32
  }
  func.func @transform_6(%arg0: i32) -> (i32, i32) {
    %c0_i32 = arith.constant 0 : i32
    %c0_i32_0 = arith.constant 0 : i32
    return %arg0, %c0_i32 : i32, i32
  }
  func.func @transform_7(%arg0: i32) -> (i32, i32, i32) {
    %c0_i32 = arith.constant 0 : i32
    %c0_i32_0 = arith.constant 0 : i32
    %c0_i32_1 = arith.constant 0 : i32
    return %arg0, %c0_i32, %c0_i32_0 : i32, i32, i32
  }
}

</mosaic_0001>

<bundles_post_ra>
// kernel: seq2seq_forward.1
= control target key start
LH: loop header
LB: loop body
LE: loop exit
PB: predicated region body
PF: predicated region fallthrough
CT: control target
= control target key end

     0   :  { %vm29_vm0 = vcmask 261120   ;;  %v358_v15 = vmov 0.0   ;;  %vm359_vm1 = vmmov 0   ;;  %v360_v46 = vmov 0   ;;  %s460_s0 = inlined_call_operand.vmem [shape: f32[16,32], index: 0, kind: input, shape index: {}]   ;;  %s461_s3 = inlined_call_operand.vmem [shape: bf16[32,32], index: 3, kind: input, shape index: {}]   ;;  %s462_s1 = inlined_call_operand.vmem [shape: f32[1,32], index: 1, kind: input, shape index: {}]   ;;  %s463_s2 = inlined_call_operand.vmem [shape: f32[1,32], index: 2, kind: input, shape index: {}]   ;;  %s464_s5 = inlined_call_operand.vmem [shape: bf16[32,128], index: 5, kind: input, shape index: {}]   ;;  %s465_s4 = inlined_call_operand.vmem [shape: f32[1,32], index: 4, kind: input, shape index: {}]   ;;  %s466_s6 = inlined_call_operand.vmem [shape: s32[16,1], index: 6, kind: input, shape index: {}]   ;;  %s467_s7 = inlined_call_operand.vmem [shape: f32[1,8,128], index: 7, kind: output, shape index: {}]  }
   0x1   :  { %v27_v0 = vld [vmem:[%s460_s0] sm:$0xff]  ;;  %v28_v1 = vld [vmem:[%s460_s0 + $0x8] sm:$0xff]  ;;  %313 = vmatprep.subr.bf16.mxu0 %v358_v15  ;;  %321 = vmatprep.subr.bf16.mxu1 %v358_v15  ;;  %v206_v47 = vlaneseq  ;;  %vm255_vm7 = vcmask 7168  }
   0x2   :  { %v30_v2 = vsel %vm29_vm0, %v27_v0, 0.0  ;;  %v33_v3 = vsel %vm29_vm0, %v28_v1, 0.0  ;;  %v338_v14 = vld [vmem:[%s461_s3] sm:$0xff]   ;;  %v339_v16 = vld [vmem:[%s461_s3 + $0x8] sm:$0xff]   ;;  %317 = vmatprep.mubr.msk.bf16.mxu0 %vm359_vm1, %v358_v15  ;;  %325 = vmatprep.mubr.msk.bf16.mxu1 %vm359_vm1, %v358_v15 }
   0x3   :  { %31 = vadd.xlane.f32.xlu0 %v30_v2  ;;  %314 = vmatpush3.bf16.msra.mxu0 %v338_v14  ;;  %v296_v25 = vld [vmem:[%s462_s1] ss:$0 sm:$0xff]  ;;  %v341_v35 = vld [vmem:[%s464_s5 + $0x8] sm:$0xff]   ;;  %v441_v48 = vand.u32 127, %v206_v47 }
   0x4   :  { %315 = vmatprep.subr.bf16.mxu0 %v358_v15  ;;  %v297_v29 = vld [vmem:[%s463_s2] ss:$0 sm:$0xff]  ;;  %337 = vset.pattern.permute.xlu1 %v360_v46  ;;  %v212_v55 = vld [vmem:[%s466_s6 + $0x8] sm:$0xff] }
   0x5   :  { %v340_v34 = vld [vmem:[%s464_s5] sm:$0xff]   ;;  %336 = vset.pattern.permute.xlu0 %v360_v46  ;;  %vm208_vm2 = vcmp.lt.s32.totalorder %v441_v48, 64  ;;  %vm214_vm6 = vcmp.ge.s32.totalorder %v212_v55, 0  ;;  %vm285_vm9 = vcmp.eq.s32.totalorder %v441_v48, 1  ;;  %vm283_vm10 = vcmp.eq.s32.totalorder %v441_v48, 0 }
   0x6   :  { %322 = vmatpush3.bf16.msra.mxu1 %v340_v34  ;;  %v298_v36 = vld [vmem:[%s465_s4] ss:$0 sm:$0xff]  ;;  %v306_v14 = vsel %vm214_vm6, 1.0, %v358_v15 }
   0x7   :  { %34 = vadd.xlane.f32.xlu0 %v33_v3  ;;  %316 = vmatpush3.bf16.msra.mxu0 %v339_v16  ;;  %v211_v56 = vld [vmem:[%s466_s6] sm:$0xff] }
   0x8   :  { %323 = vmatprep.subr.bf16.mxu1 %v358_v15  ;;  %vm213_vm5 = vcmp.ge.s32.totalorder %v211_v56, 0 }
   0xa   :  { %324 = vmatpush3.bf16.msra.mxu1 %v341_v35 }
  0x90   :  { %v32_v4 = vpop.xlane.xlu0 %31 }
  0x91   :  { %v37_v5 = vmul.f32 0.03125, %v32_v4 }
  0x93   :  { %v39_v6 = vsub.f32 %v27_v0, %v37_v5 }
  0x94   :  { %v35_v7 = vpop.xlane.xlu0 %34 }
  0x95   :  { %v38_v8 = vmul.f32 0.03125, %v35_v7  ;;  %v41_v9 = vmul.f32 %v39_v6, %v39_v6 }
  0x97   :  { %v40_v10 = vsub.f32 %v28_v1, %v38_v8  ;;  %v43_v11 = vsel %vm29_vm0, %v41_v9, 0.0 }
  0x98   :  { %44 = vadd.xlane.f32.xlu1 %v43_v11  ;;  %v305_v11 = vsel %vm213_vm5, 1.0, %v358_v15 }
  0x99   :  { %v42_v12 = vmul.f32 %v40_v10, %v40_v10 }
  0x9b   :  { %v46_v13 = vsel %vm29_vm0, %v42_v12, 0.0 }
  0x9c   :  { %47 = vadd.xlane.f32.xlu1 %v46_v13 }
 0x125   :  { %v45_v17 = vpop.xlane.xlu1 %44 }
 0x126   :  { %v49_v18 = vmul.f32 0.03125, %v45_v17 }
 0x128   :  { %v51_v19 = vadd.f32 1e-05, %v49_v18 }
 0x129   :  { %v48_v20 = vpop.xlane.xlu1 %47 }
 0x12a   :  { %342 = vrsqrt.f32 %v51_v19  ;;  %v50_v21 = vmul.f32 0.03125, %v48_v20 }
 0x12c   :  { %v52_v22 = vadd.f32 1e-05, %v50_v21 }
 0x12e   :  { %344 = vrsqrt.f32 %v52_v22  ;;  %v268_v22 = vsel %vm255_vm7, %v305_v11, 0.0 }
 0x134   :  { %v343_v23 = vpop.eup %342 }
 0x135   :  { %v55_v24 = vmul.f32 %v343_v23, %v39_v6  ;;  %v269_v23 = vsel %vm255_vm7, %v306_v14, 0.0 }
 0x137   :  { %v64_v28 = vmul.f32 %v296_v25, %v55_v24 }
 0x138   :  { %v345_v26 = vpop.eup %344 }
 0x139   :  { %v56_v27 = vmul.f32 %v345_v26, %v40_v10  ;;  %v73_v31 = vadd.f32 %v297_v29, %v64_v28 }
 0x13b   :  { %v65_v30 = vmul.f32 %v296_v25, %v56_v27  ;;  %v270_v25 = vadd.f32 %v269_v23, %v268_v22 }
 0x13d   :  { %v74_v32 = vadd.f32 %v297_v29, %v65_v30 }
 0x13f   :  { %v75_v33 = vpack.c.bf16 %v74_v32, %v73_v31 }
 0x141   :  { %318 = vmatmul.mubr.msk.bf16.vlgmr.msra.gmra.mrb[0].mxu0 %vm29_vm0, %v75_v33 }
 0x214   :  { %v136_v37 = vpop.f32.mrb[0].mxu0 }
 0x215   :  { %v137_v38 = vadd.f32 %v298_v36, %v136_v37  ;;  %v319_v39 = vpop.f32.mrb[1].mxu0 }
 0x216   :  { %v139_v40 = vpop.f32.mrb[2].mxu0  ;;  %v281_v39 = vshrl.u32 %v206_v47, 7 }
 0x217   :  { %v140_v41 = vadd.f32 %v298_v36, %v139_v40  ;;  %v320_v42 = vpop.f32.mrb[3].mxu0  ;;  %346 = vtanh.f32 %v137_v38 }
 0x218   :  { %vm282_vm8 = vcmp.eq.s32.totalorder %v281_v39, 0 }
 0x219   :  { %348 = vtanh.f32 %v140_v41  ;;  %vm286_vm11 = vmand %vm282_vm8, %vm285_vm9 }
 0x21a   :  { %vm284_vm12 = vmand %vm282_vm8, %vm283_vm10 }
 0x221   :  { %v347_v43 = vpop.eup %346 }
 0x223   :  { %v349_v44 = vpop.eup %348 }
 0x224   :  { %v145_v45 = vpack.c.bf16 %v349_v44, %v347_v43 }
 0x226   :  { %326 = vmatmul.mubr.msk.bf16.vlgmr.msra.gmra.mrb[0].mxu1 %vm29_vm0, %v145_v45 }
 0x2f9   :  { %v199_v49 = vpop.f32.mrb[0].mxu1 }
 0x2fa   :  { %v327_v50 = vpop.f32.mrb[1].mxu1  ;;  %v209_v51 = vsel %vm208_vm2, %v199_v49, -1e+09 }
 0x2fb   :  { %219 = vmax.xlane.f32.xlu0 %v209_v51  ;;  %v202_v52 = vpop.f32.mrb[2].mxu1 }
 0x2fc   :  { %v328_v53 = vpop.f32.mrb[3].mxu1  ;;  %v210_v54 = vsel %vm208_vm2, %v202_v52, -1e+09 }
 0x2fd   :  { %221 = vmax.xlane.f32.xlu1 %v210_v54 }
 0x30e   :  { %237 = vperm.xlu1 %337, %v212_v55  }
 0x311   :  { %234 = vperm.xlu0 %336, %v211_v56  }
 0x388   :  { %v220_v57 = vpop.xlane.xlu0 %219 }
 0x389   :  { %v223_v58 = vsub.f32 %v209_v51, %v220_v57 }
 0x38a   :  { %v222_v59 = vpop.xlane.xlu1 %221 }
 0x38b   :  { %v225_v60 = vmul.f32 1.442695, %v223_v58  ;;  %v224_v61 = vsub.f32 %v210_v54, %v222_v59 }
 0x38d   :  { %350 = vpow2.f32 %v225_v60  ;;  %v227_v62 = vmul.f32 1.442695, %v224_v61 }
 0x38e   :  { %v238_v2 = vpop.permute.xlu1 %237 }
 0x38f   :  { %352 = vpow2.f32 %v227_v62  ;;  %vm240_vm4 = vcmp.eq.s32.totalorder %v441_v48, %v238_v2 }
 0x390   :  { %v235_v63 = vpop.permute.xlu0 %234  ;;  %v242_v4 = vsel %vm240_vm4, %v224_v61, 0.0 }
 0x391   :  { %vm239_vm3 = vcmp.eq.s32.totalorder %v441_v48, %v235_v63 }
 0x392   :  { %v241_v3 = vsel %vm239_vm3, %v223_v58, 0.0 }
 0x397   :  { %v351_v0 = vpop.eup %350 }
 0x398   :  { %229 = vadd.xlane.f32.xlu1 %v351_v0 }
 0x399   :  { %v353_v1 = vpop.eup %352 }
 0x39a   :  { %231 = vadd.xlane.f32.xlu0 %v353_v1 }
 0x39c   :  { %243 = vadd.xlane.f32.xlu1 %v241_v3 }
 0x3a0   :  { %245 = vadd.xlane.f32.xlu1 %v242_v4 }
 0x425   :  { %v230_v5 = vpop.xlane.xlu1 %229 }
 0x426   :  { %354 = vlog2.f32 %v230_v5 }
 0x427   :  { %v232_v6 = vpop.xlane.xlu0 %231 }
 0x428   :  { %356 = vlog2.f32 %v232_v6 }
 0x429   :  { %v244_v7 = vpop.xlane.xlu1 %243 }
 0x42d   :  { %v246_v16 = vpop.xlane.xlu1 %245 }
 0x430   :  { %v355_v8 = vpop.eup %354 }
 0x431   :  { %v248_v9 = vmul.f32 0.6931472, %v355_v8 }
 0x432   :  { %v357_v10 = vpop.eup %356 }
 0x433   :  { %v251_v12 = vsub.f32 %v248_v9, %v244_v7  ;;  %v250_v13 = vmul.f32 0.6931472, %v357_v10 }
 0x435   :  { %v253_v17 = vmul.f32 %v305_v11, %v251_v12  ;;  %v252_v18 = vsub.f32 %v250_v13, %v246_v16 }
 0x437   :  { %v254_v19 = vmul.f32 %v306_v14, %v252_v18  ;;  %v256_v20 = vsel %vm255_vm7, %v253_v17, 0.0 }
 0x439   :  { %v257_v21 = vsel %vm255_vm7, %v254_v19, 0.0 }
 0x43a   :  { %v258_v24 = vadd.f32 %v257_v21, %v256_v20 }
 0x43c   :  { %259 = vadd.xlane.f32.xlu1 %v258_v24 }
 0x440   :  { %271 = vadd.xlane.f32.xlu1 %v270_v25 }
 0x4c9   :  { %v260_v26 = vpop.xlane.xlu1 %259 }
 0x4ca   :  { %v261_v27 = vrot.slane %v260_v26, 4 }
 0x4cc   :  { %v262_v28 = vadd.f32 %v261_v27, %v260_v26 }
 0x4cd   :  { %v272_v29 = vpop.xlane.xlu1 %271 }
 0x4ce   :  { %v263_v30 = vrot.slane %v262_v28, 2  ;;  %v273_v31 = vrot.slane %v272_v29, 4 }
 0x4d0   :  { %v274_v15 = vadd.f32 %v273_v31, %v272_v29  ;;  %v264_v32 = vadd.f32 %v263_v30, %v262_v28 }
 0x4d2   :  { %v275_v33 = vrot.slane %v274_v15, 2  ;;  %v265_v34 = vrot.slane %v264_v32, 1 }
 0x4d4   :  { %v276_v35 = vadd.f32 %v275_v33, %v274_v15  ;;  %v266_v36 = vadd.f32 %v265_v34, %v264_v32 }
 0x4d6   :  { %329 = vpush %v266_v36  ;;  %v277_v37 = vrot.slane %v276_v35, 1 }
 0x4d8   :  { %v278_v38 = vadd.f32 %v277_v37, %v276_v35 }
 0x4da   :  { %331 = vpush %v278_v38 }
 0x507   :  { %s330_s6 = spop %329 }
 0x508   :  { %v289_v41 = vstv %s330_s6 }
 0x50b   :  { %s332_s17 = spop %331 }
 0x50c   :  { %v287_v40 = vstv %s332_s17 }
 0x50d   :  { %v288_v42 = vsel %vm286_vm11, %v287_v40, 0.0 }
 0x50e   :  { %v290_v43 = vsel %vm284_vm12, %v289_v41, %v288_v42 }
 0x50f   :  { %291 = vst [vmem:[%s467_s7] sm:$0xff] %v290_v43 }

</bundles_post_ra>
